<compile_context>
chip_gen: v6e
topology: v6e:2x2x1
jax: 0.10.0
libtpu: 0.0.40
codegen_flags: <defaults>
</compile_context>

<pallas_src>
import functools

import jax
import jax.numpy as jnp
from jax import lax
from jax.experimental import pallas as pl
from jax.experimental.pallas import tpu as pltpu

NUM_CLASSES = 21
EPS = 1e-7


def _csd_loss_kernel(conf_ref, conf_flip_ref, loc_ref, loc_flip_ref, out_ref,
                     kl_acc, loc_acc, cnt_acc, *,
                     block_rows, total_rows, blocks_per_slice, needs_row_mask):
    s = pl.program_id(0)   # slice axis ("parallel"; split across TCs on v7x)
    i = pl.program_id(1)   # row-block axis within the slice ("arbitrary")

    @pl.when(i == 0)
    def _init():
        kl_acc[...] = jnp.zeros_like(kl_acc)
        loc_acc[...] = jnp.zeros_like(loc_acc)
        cnt_acc[...] = jnp.zeros_like(cnt_acc)

    # Upcast on the VPU; inputs stream from HBM in their native dtype.
    conf = conf_ref[...].astype(jnp.float32)          # (TM, 21)
    conf_f = conf_flip_ref[...].astype(jnp.float32)   # (TM, 21)
    loc = loc_ref[...].astype(jnp.float32)            # (TM, 4)
    loc_f = loc_flip_ref[...].astype(jnp.float32)     # (TM, 4)

    # Foreground mask: max class score excluding background (col 0) > background.
    # iota-masked max instead of the lane slice conf[:, 1:] (no relayout copy).
    ccol = lax.broadcasted_iota(jnp.int32, conf.shape, 1)                  # (TM, 21)
    cls_max = jnp.max(jnp.where(ccol >= 1, conf, -jnp.inf), axis=-1, keepdims=True)
    bg = conf[:, 0:1]                                                      # (TM, 1)
    mask = cls_max > bg                                                    # (TM, 1) bool

    if needs_row_mask:
        # Rows past the real end (partial tail block, or clamped duplicate blocks from
        # the slice split) must contribute nothing. Only (TM, 1) worth of extra VPU
        # work; garbage data in those rows is neutralized by the select-based masking
        # below (jnp.where discards NaN/Inf in the dead branch).
        blk = s * blocks_per_slice + i
        row = blk * block_rows + lax.broadcasted_iota(jnp.int32, (conf.shape[0], 1), 0)
        mask = jnp.logical_and(mask, row < total_rows)

    # Fused symmetric KL: KL(q||p) + KL(p||q) = sum_c (q - p) * (log q - log p).
    p = conf + EPS
    q = conf_f + EPS
    kl_elem = jnp.where(mask, (q - p) * (jnp.log(q) - jnp.log(p)), 0.0)    # (TM, 21)

    # Location consistency; flipped-x sign convention: (+) for x, (-) for y/w/h.
    lcol = lax.broadcasted_iota(jnp.int32, (1, 4), 1)
    sign = jnp.where(lcol == 0, 1.0, -1.0)                                 # (1, 4)
    d = loc + sign * loc_f                                                 # (TM, 4)
    loc_sq = jnp.where(mask, d * d, 0.0)                                   # (TM, 4)

    # Per-tile partial sums; lane reductions and the divides are deferred.
    kl_acc[...] = kl_acc[...] + jnp.sum(kl_elem, axis=0, keepdims=True)    # (1, 21)
    loc_acc[...] = loc_acc[...] + jnp.sum(loc_sq, axis=0, keepdims=True)   # (1, 4)
    cnt_acc[...] = cnt_acc[...] + jnp.sum(mask.astype(jnp.float32), axis=0,
                                          keepdims=True)                   # (1, 1)

    @pl.when(i == pl.num_programs(1) - 1)
    def _finalize():
        kl_s = jnp.sum(kl_acc[...])     # scalar
        loc_s = jnp.sum(loc_acc[...])   # scalar
        cnt_s = jnp.sum(cnt_acc[...])   # scalar
        sub = lax.broadcasted_iota(jnp.int32, out_ref.shape, 1)
        lane = lax.broadcasted_iota(jnp.int32, out_ref.shape, 2)
        out = jnp.where(jnp.logical_and(sub == 0, lane == 0), kl_s, 0.0)
        out = jnp.where(jnp.logical_and(sub == 0, lane == 1), loc_s, out)
        out = jnp.where(jnp.logical_and(sub == 0, lane == 2), cnt_s, out)
        out_ref[...] = out


@functools.partial(jax.jit, static_argnames=("tile_rows", "num_slices"))
def csd_loss(conf, conf_flip, loc, loc_flip, *, tile_rows=2048, num_slices=2):
    """conf/conf_flip: (B, N, 21); loc/loc_flip: (B, N, 4). Returns scalar f32 loss.

    tile_rows: rows per grid step (default 2048 keeps the double-buffered VMEM
      footprint at 8 MiB f32 / 4 MiB bf16 -- safe on v5e/v6e/v7x scoped defaults).
    num_slices: leading "parallel" grid axis; 2 feeds both TensorCores on v7x.
    bf16 inputs are supported (and recommended on v5e to halve HBM traffic).
    """
    B, N, C = conf.shape
    assert C == NUM_CLASSES
    assert tile_rows > 0 and tile_rows % 16 == 0   # f32 (8,128) and bf16 (16,128) tiles
    M = B * N

    # Row-major flatten only; keep native dtype (no extra HBM pass for a cast).
    conf2 = conf.reshape(M, NUM_CLASSES)
    conf_flip2 = conf_flip.reshape(M, NUM_CLASSES)
    loc2 = loc.reshape(M, 4)
    loc_flip2 = loc_flip.reshape(M, 4)

    # Tile choice: full-array block if M is small, else fixed row tiles; partial tail
    # blocks and duplicated (clamped) blocks are neutralized by the in-kernel row mask.
    tm = M if M <= tile_rows else tile_rows
    nblocks = pl.cdiv(M, tm)
    S = max(1, min(num_slices, nblocks))          # parallel slices (<= #blocks)
    T = pl.cdiv(nblocks, S)                       # row blocks per slice
    needs_row_mask = (S * T * tm) != M

    def row_block(s_, i_):
        # Clamp so duplicated steps (when S*T > nblocks) never DMA out of bounds;
        # their contribution is zeroed by the in-kernel row-validity mask.
        return jnp.minimum(s_ * T + i_, nblocks - 1)

    kernel = functools.partial(_csd_loss_kernel, block_rows=tm, total_rows=M,
                               blocks_per_slice=T, needs_row_mask=needs_row_mask)

    itemsize = jnp.dtype(conf.dtype).itemsize
    cost = pl.CostEstimate(
        flops=int(10 * M * (NUM_CLASSES + 4)),
        transcendentals=int(2 * M * NUM_CLASSES),
        bytes_accessed=int(2 * M * (NUM_CLASSES + 4) * itemsize),
    )

    partials = pl.pallas_call(
        kernel,
        out_shape=jax.ShapeDtypeStruct((S, 8, 128), jnp.float32),
        grid_spec=pltpu.PrefetchScalarGridSpec(
            num_scalar_prefetch=0,
            grid=(S, T),
            in_specs=[
                pl.BlockSpec((tm, NUM_CLASSES), lambda s_, i_: (row_block(s_, i_), 0)),
                pl.BlockSpec((tm, NUM_CLASSES), lambda s_, i_: (row_block(s_, i_), 0)),
                pl.BlockSpec((tm, 4), lambda s_, i_: (row_block(s_, i_), 0)),
                pl.BlockSpec((tm, 4), lambda s_, i_: (row_block(s_, i_), 0)),
            ],
            out_specs=pl.BlockSpec((1, 8, 128), lambda s_, i_: (s_, 0, 0)),
            scratch_shapes=[
                pltpu.VMEM((1, NUM_CLASSES), jnp.float32),  # masked sym-KL, per class
                pltpu.VMEM((1, 4), jnp.float32),            # masked loc terms, per coord
                pltpu.VMEM((1, 1), jnp.float32),            # masked row count
            ],
        ),
        compiler_params=pltpu.CompilerParams(
            dimension_semantics=("parallel", "arbitrary")),
        cost_estimate=cost,
    )(conf2, conf_flip2, loc2, loc_flip2)

    kl_sum = jnp.sum(partials[:, 0, 0])
    loc_sum = jnp.sum(partials[:, 0, 1])
    cnt = jnp.sum(partials[:, 0, 2])
    safe = jnp.maximum(cnt, 1.0)
    total = kl_sum / (2.0 * safe) + loc_sum / (4.0 * safe)
    return jnp.where(cnt > 0.0, total, jnp.zeros_like(total))


def _csd_loss_ref(conf, conf_flip, loc, loc_flip):
    """Pure-JAX reference mirroring the PyTorch forward."""
    conf = conf.astype(jnp.float32)
    conf_flip = conf_flip.astype(jnp.float32)
    loc = loc.astype(jnp.float32)
    loc_flip = loc_flip.astype(jnp.float32)

    mask = jnp.max(conf[:, :, 1:], axis=2) > conf[:, :, 0]         # (B, N)
    m = mask.astype(jnp.float32)
    cnt = jnp.sum(m)

    p = conf + EPS
    q = conf_flip + EPS
    kl_a = jnp.sum(q * (jnp.log(q) - jnp.log(p)), axis=-1)
    kl_b = jnp.sum(p * (jnp.log(p) - jnp.log(q)), axis=-1)
    conf_loss = jnp.sum(m * (kl_a + kl_b)) / jnp.maximum(cnt, 1.0) / 2.0

    dx = loc[..., 0] + loc_flip[..., 0]
    dy = loc[..., 1] - loc_flip[..., 1]
    dw = loc[..., 2] - loc_flip[..., 2]
    dh = loc[..., 3] - loc_flip[..., 3]
    loc_loss = jnp.sum(m * (dx**2 + dy**2 + dw**2 + dh**2)) / jnp.maximum(cnt, 1.0) / 4.0

    return jnp.where(cnt > 0, conf_loss + loc_loss, 0.0)


if __name__ == "__main__":
    key = jax.random.PRNGKey(0)
    k1, k2, k3, k4 = jax.random.split(key, 4)

    # Small shapes; N chosen so M = 122 is not a multiple of common tile sizes,
    # exercising the tail / clamped-duplicate-block paths below.
    B, N = 2, 61
    conf = jax.nn.softmax(jax.random.normal(k1, (B, N, NUM_CLASSES)) * 2.0, axis=-1)
    conf_flip = jax.nn.softmax(jax.random.normal(k2, (B, N, NUM_CLASSES)) * 2.0, axis=-1)
    loc = jax.random.normal(k3, (B, N, 4))
    loc_flip = jax.random.normal(k4, (B, N, 4))

    ref = _csd_loss_ref(conf, conf_flip, loc, loc_flip)

    # 1) Default: single full-array block (grid = (1, 1)).
    loss = jax.block_until_ready(csd_loss(conf, conf_flip, loc, loc_flip))
    assert jnp.allclose(loss, ref, rtol=1e-5, atol=1e-5), (loss, ref)

    # 2) Two slices, one 64-row block each; second block is a partial tail block.
    loss2 = jax.block_until_ready(csd_loss(conf, conf_flip, loc, loc_flip, tile_rows=64))
    assert jnp.allclose(loss2, ref, rtol=1e-5, atol=1e-5), (loss2, ref)

    # 3) 48-row tiles -> 3 real blocks over a (2, 2) grid: exercises the clamped
    #    duplicate block (fully masked out by the row-validity mask).
    loss3 = jax.block_until_ready(csd_loss(conf, conf_flip, loc, loc_flip, tile_rows=48))
    assert jnp.allclose(loss3, ref, rtol=1e-5, atol=1e-5), (loss3, ref)

    # 4) Native bf16 inputs: no wrapper-side upcast, kernel casts on the VPU.
    conf_b = conf.astype(jnp.bfloat16)
    conf_flip_b = conf_flip.astype(jnp.bfloat16)
    loc_b = loc.astype(jnp.bfloat16)
    loc_flip_b = loc_flip.astype(jnp.bfloat16)
    loss4 = jax.block_until_ready(csd_loss(conf_b, conf_flip_b, loc_b, loc_flip_b))
    ref4 = _csd_loss_ref(conf_b, conf_flip_b, loc_b, loc_flip_b)
    assert jnp.allclose(loss4, ref4, rtol=1e-4, atol=1e-4), (loss4, ref4)

    print("KERNEL_OK")
</pallas_src>

<mosaic_0001>
module attributes {stable_mosaic.version = 11 : i64} {
  func.func @_csd_loss_kernel(%arg0: i32, %arg1: i32, %arg2: memref<122x21xf32, #tpu.memory_space<vmem>>, %arg3: memref<122x21xf32, #tpu.memory_space<vmem>>, %arg4: memref<122x4xf32, #tpu.memory_space<vmem>>, %arg5: memref<122x4xf32, #tpu.memory_space<vmem>>, %arg6: memref<1x8x128xf32, #tpu.memory_space<vmem>>, %arg7: memref<1x21xf32, #tpu.memory_space<vmem>>, %arg8: memref<1x4xf32, #tpu.memory_space<vmem>>, %arg9: memref<1x1xf32, #tpu.memory_space<vmem>>) attributes {dimension_semantics = [#tpu.dimension_semantics<parallel>, #tpu.dimension_semantics<arbitrary>], iteration_bounds = array<i64: 1, 1>, scalar_prefetch = 0 : i64, scratch_operands = 3 : i64, tpu.core_type = #tpu.core_type<tc>, window_params = [{transform_indices = @transform_0, window_bounds = array<i64: 122, 21>}, {transform_indices = @transform_1, window_bounds = array<i64: 122, 21>}, {transform_indices = @transform_2, window_bounds = array<i64: 122, 4>}, {transform_indices = @transform_3, window_bounds = array<i64: 122, 4>}, {transform_indices = @transform_4, window_bounds = array<i64: 1, 8, 128>}]} {
    %c0_i32 = arith.constant 0 : i32
    %0 = arith.cmpi eq, %arg1, %c0_i32 : i32
    %1 = arith.extui %0 : i1 to i32
    %c0_i32_0 = arith.constant 0 : i32
    %2 = arith.cmpi ne, %1, %c0_i32_0 : i32
    scf.if %2 {
      %cst_33 = arith.constant 0.000000e+00 : f32
      %63 = vector.broadcast %cst_33 : f32 to vector<1x21xf32>
      %c0_34 = arith.constant 0 : index
      %c0_35 = arith.constant 0 : index
      %64 = vector.load %arg7[%c0_34, %c0_35] : memref<1x21xf32, #tpu.memory_space<vmem>>, vector<1x21xf32>
      tpu.vector_store %arg7[%c0_34, %c0_35], %63 {strides = array<i32>} : memref<1x21xf32, #tpu.memory_space<vmem>>, vector<1x21xf32>,
      %cst_36 = arith.constant 0.000000e+00 : f32
      %65 = vector.broadcast %cst_36 : f32 to vector<1x4xf32>
      %c0_37 = arith.constant 0 : index
      %c0_38 = arith.constant 0 : index
      %66 = vector.load %arg8[%c0_37, %c0_38] : memref<1x4xf32, #tpu.memory_space<vmem>>, vector<1x4xf32>
      tpu.vector_store %arg8[%c0_37, %c0_38], %65 {strides = array<i32>} : memref<1x4xf32, #tpu.memory_space<vmem>>, vector<1x4xf32>,
      %cst_39 = arith.constant 0.000000e+00 : f32
      %67 = vector.broadcast %cst_39 : f32 to vector<1x1xf32>
      %c0_40 = arith.constant 0 : index
      %c0_41 = arith.constant 0 : index
      %68 = vector.load %arg9[%c0_40, %c0_41] : memref<1x1xf32, #tpu.memory_space<vmem>>, vector<1x1xf32>
      tpu.vector_store %arg9[%c0_40, %c0_41], %67 {strides = array<i32>} : memref<1x1xf32, #tpu.memory_space<vmem>>, vector<1x1xf32>,
    } else {
    }
    %c0 = arith.constant 0 : index
    %c0_1 = arith.constant 0 : index
    %3 = vector.load %arg2[%c0, %c0_1] : memref<122x21xf32, #tpu.memory_space<vmem>>, vector<122x21xf32>
    %c0_2 = arith.constant 0 : index
    %c0_3 = arith.constant 0 : index
    %4 = vector.load %arg3[%c0_2, %c0_3] : memref<122x21xf32, #tpu.memory_space<vmem>>, vector<122x21xf32>
    %c0_4 = arith.constant 0 : index
    %c0_5 = arith.constant 0 : index
    %5 = vector.load %arg4[%c0_4, %c0_5] : memref<122x4xf32, #tpu.memory_space<vmem>>, vector<122x4xf32>
    %c0_6 = arith.constant 0 : index
    %c0_7 = arith.constant 0 : index
    %6 = vector.load %arg5[%c0_6, %c0_7] : memref<122x4xf32, #tpu.memory_space<vmem>>, vector<122x4xf32>
    %7 = tpu.iota {dimensions = array<i32: 1>} : vector<122x21xi32>
    %c1_i32 = arith.constant 1 : i32
    %8 = vector.broadcast %c1_i32 : i32 to vector<122x21xi32>
    %9 = arith.cmpi sge, %7, %8 : vector<122x21xi32>
    %cst = arith.constant 0xFF800000 : f32
    %10 = vector.broadcast %cst : f32 to vector<122x21xf32>
    %11 = arith.select %9, %3, %10 : vector<122x21xi1>, vector<122x21xf32>
    %cst_8 = arith.constant dense<0xFF800000> : vector<122xf32>
    %12 = vector.multi_reduction <maximumf>, %11, %cst_8 [1] : vector<122x21xf32> to vector<122xf32>
    %13 = vector.shape_cast %12 : vector<122xf32> to vector<122x1xf32>
    %14 = vector.extract_strided_slice %3 {offsets = [0, 0], sizes = [122, 1], strides = [1, 1]} : vector<122x21xf32> to vector<122x1xf32>
    %15 = arith.cmpf ogt, %13, %14 : vector<122x1xf32>
    %cst_9 = arith.constant 1.000000e-07 : f32
    %16 = vector.broadcast %cst_9 : f32 to vector<122x21xf32>
    %17 = arith.addf %3, %16 : vector<122x21xf32>
    %cst_10 = arith.constant 1.000000e-07 : f32
    %18 = vector.broadcast %cst_10 : f32 to vector<122x21xf32>
    %19 = arith.addf %4, %18 : vector<122x21xf32>
    %20 = arith.subf %19, %17 : vector<122x21xf32>
    %21 = math.log %19 : vector<122x21xf32>
    %22 = math.log %17 : vector<122x21xf32>
    %23 = arith.subf %21, %22 : vector<122x21xf32>
    %24 = arith.mulf %20, %23 : vector<122x21xf32>
    %cst_11 = arith.constant 0.000000e+00 : f32
    %25 = vector.shape_cast %15 : vector<122x1xi1> to vector<122x1xi1>
    %26 = vector.broadcast %25 : vector<122x1xi1> to vector<122x21xi1>
    %27 = vector.broadcast %cst_11 : f32 to vector<122x21xf32>
    %28 = arith.select %26, %24, %27 : vector<122x21xi1>, vector<122x21xf32>
    %29 = tpu.iota {dimensions = array<i32: 1>} : vector<1x4xi32>
    %c0_i32_12 = arith.constant 0 : i32
    %30 = vector.broadcast %c0_i32_12 : i32 to vector<1x4xi32>
    %31 = arith.cmpi eq, %29, %30 : vector<1x4xi32>
    %cst_13 = arith.constant 1.000000e+00 : f32
    %cst_14 = arith.constant -1.000000e+00 : f32
    %32 = vector.broadcast %cst_13 : f32 to vector<1x4xf32>
    %33 = vector.broadcast %cst_14 : f32 to vector<1x4xf32>
    %34 = arith.select %31, %32, %33 : vector<1x4xi1>, vector<1x4xf32>
    %35 = vector.broadcast %34 : vector<1x4xf32> to vector<122x4xf32>
    %36 = arith.mulf %35, %6 : vector<122x4xf32>
    %37 = arith.addf %5, %36 : vector<122x4xf32>
    %38 = arith.mulf %37, %37 : vector<122x4xf32>
    %cst_15 = arith.constant 0.000000e+00 : f32
    %39 = vector.shape_cast %15 : vector<122x1xi1> to vector<122x1xi1>
    %40 = vector.broadcast %39 : vector<122x1xi1> to vector<122x4xi1>
    %41 = vector.broadcast %cst_15 : f32 to vector<122x4xf32>
    %42 = arith.select %40, %38, %41 : vector<122x4xi1>, vector<122x4xf32>
    %c0_16 = arith.constant 0 : index
    %c0_17 = arith.constant 0 : index
    %43 = vector.load %arg7[%c0_16, %c0_17] : memref<1x21xf32, #tpu.memory_space<vmem>>, vector<1x21xf32>
    %cst_18 = arith.constant dense<0.000000e+00> : vector<21xf32>
    %44 = vector.multi_reduction <add>, %28, %cst_18 [0] : vector<122x21xf32> to vector<21xf32>
    %45 = vector.shape_cast %44 : vector<21xf32> to vector<1x21xf32>
    %46 = arith.addf %43, %45 : vector<1x21xf32>
    %c0_19 = arith.constant 0 : index
    %c0_20 = arith.constant 0 : index
    %47 = vector.load %arg7[%c0_19, %c0_20] : memref<1x21xf32, #tpu.memory_space<vmem>>, vector<1x21xf32>
    tpu.vector_store %arg7[%c0_19, %c0_20], %46 {strides = array<i32>} : memref<1x21xf32, #tpu.memory_space<vmem>>, vector<1x21xf32>,
    %c0_21 = arith.constant 0 : index
    %c0_22 = arith.constant 0 : index
    %48 = vector.load %arg8[%c0_21, %c0_22] : memref<1x4xf32, #tpu.memory_space<vmem>>, vector<1x4xf32>
    %cst_23 = arith.constant dense<0.000000e+00> : vector<4xf32>
    %49 = vector.multi_reduction <add>, %42, %cst_23 [0] : vector<122x4xf32> to vector<4xf32>
    %50 = vector.shape_cast %49 : vector<4xf32> to vector<1x4xf32>
    %51 = arith.addf %48, %50 : vector<1x4xf32>
    %c0_24 = arith.constant 0 : index
    %c0_25 = arith.constant 0 : index
    %52 = vector.load %arg8[%c0_24, %c0_25] : memref<1x4xf32, #tpu.memory_space<vmem>>, vector<1x4xf32>
    tpu.vector_store %arg8[%c0_24, %c0_25], %51 {strides = array<i32>} : memref<1x4xf32, #tpu.memory_space<vmem>>, vector<1x4xf32>,
    %c0_26 = arith.constant 0 : index
    %c0_27 = arith.constant 0 : index
    %53 = vector.load %arg9[%c0_26, %c0_27] : memref<1x1xf32, #tpu.memory_space<vmem>>, vector<1x1xf32>
    %54 = arith.extui %15 : vector<122x1xi1> to vector<122x1xi32>
    %55 = arith.sitofp %54 : vector<122x1xi32> to vector<122x1xf32>
    %cst_28 = arith.constant dense<0.000000e+00> : vector<1xf32>
    %56 = vector.multi_reduction <add>, %55, %cst_28 [0] : vector<122x1xf32> to vector<1xf32>
    %57 = vector.shape_cast %56 : vector<1xf32> to vector<1x1xf32>
    %58 = arith.addf %53, %57 : vector<1x1xf32>
    %c0_29 = arith.constant 0 : index
    %c0_30 = arith.constant 0 : index
    %59 = vector.load %arg9[%c0_29, %c0_30] : memref<1x1xf32, #tpu.memory_space<vmem>>, vector<1x1xf32>
    tpu.vector_store %arg9[%c0_29, %c0_30], %58 {strides = array<i32>} : memref<1x1xf32, #tpu.memory_space<vmem>>, vector<1x1xf32>,
    %c0_i32_31 = arith.constant 0 : i32
    %60 = arith.cmpi eq, %arg1, %c0_i32_31 : i32
    %61 = arith.extui %60 : i1 to i32
    %c0_i32_32 = arith.constant 0 : i32
    %62 = arith.cmpi ne, %61, %c0_i32_32 : i32
    scf.if %62 {
      %c0_33 = arith.constant 0 : index
      %c0_34 = arith.constant 0 : index
      %63 = vector.load %arg7[%c0_33, %c0_34] : memref<1x21xf32, #tpu.memory_space<vmem>>, vector<1x21xf32>
      %64 = vector.shape_cast %63 : vector<1x21xf32> to vector<1x1x21xf32>
      %cst_35 = arith.constant dense<0.000000e+00> : vector<1xf32>
      %65 = vector.multi_reduction <add>, %64, %cst_35 [1, 2] : vector<1x1x21xf32> to vector<1xf32>
      %66 = vector.shape_cast %65 : vector<1xf32> to vector<1x1x1xf32>
      %67 = vector.extract %66[0, 0, 0] : f32 from vector<1x1x1xf32>
      %c0_36 = arith.constant 0 : index
      %c0_37 = arith.constant 0 : index
      %68 = vector.load %arg8[%c0_36, %c0_37] : memref<1x4xf32, #tpu.memory_space<vmem>>, vector<1x4xf32>
      %69 = vector.shape_cast %68 : vector<1x4xf32> to vector<1x1x4xf32>
      %cst_38 = arith.constant dense<0.000000e+00> : vector<1xf32>
      %70 = vector.multi_reduction <add>, %69, %cst_38 [1, 2] : vector<1x1x4xf32> to vector<1xf32>
      %71 = vector.shape_cast %70 : vector<1xf32> to vector<1x1x1xf32>
      %72 = vector.extract %71[0, 0, 0] : f32 from vector<1x1x1xf32>
      %c0_39 = arith.constant 0 : index
      %c0_40 = arith.constant 0 : index
      %73 = vector.load %arg9[%c0_39, %c0_40] : memref<1x1xf32, #tpu.memory_space<vmem>>, vector<1x1xf32>
      %74 = vector.shape_cast %73 : vector<1x1xf32> to vector<1x1x1xf32>
      %cst_41 = arith.constant dense<0.000000e+00> : vector<1xf32>
      %75 = vector.multi_reduction <add>, %74, %cst_41 [1, 2] : vector<1x1x1xf32> to vector<1xf32>
      %76 = vector.shape_cast %75 : vector<1xf32> to vector<1x1x1xf32>
      %77 = vector.extract %76[0, 0, 0] : f32 from vector<1x1x1xf32>
      %78 = tpu.iota {dimensions = array<i32: 1>} : vector<1x8x128xi32>
      %79 = tpu.iota {dimensions = array<i32: 2>} : vector<1x8x128xi32>
      %c0_i32_42 = arith.constant 0 : i32
      %80 = vector.broadcast %c0_i32_42 : i32 to vector<1x8x128xi32>
      %81 = arith.cmpi eq, %78, %80 : vector<1x8x128xi32>
      %c0_i32_43 = arith.constant 0 : i32
      %82 = vector.broadcast %c0_i32_43 : i32 to vector<1x8x128xi32>
      %83 = arith.cmpi eq, %79, %82 : vector<1x8x128xi32>
      %84 = arith.andi %81, %83 : vector<1x8x128xi1>
      %cst_44 = arith.constant 0.000000e+00 : f32
      %85 = vector.broadcast %67 : f32 to vector<1x8x128xf32>
      %86 = vector.broadcast %cst_44 : f32 to vector<1x8x128xf32>
      %87 = arith.select %84, %85, %86 : vector<1x8x128xi1>, vector<1x8x128xf32>
      %c0_i32_45 = arith.constant 0 : i32
      %88 = vector.broadcast %c0_i32_45 : i32 to vector<1x8x128xi32>
      %89 = arith.cmpi eq, %78, %88 : vector<1x8x128xi32>
      %c1_i32_46 = arith.constant 1 : i32
      %90 = vector.broadcast %c1_i32_46 : i32 to vector<1x8x128xi32>
      %91 = arith.cmpi eq, %79, %90 : vector<1x8x128xi32>
      %92 = arith.andi %89, %91 : vector<1x8x128xi1>
      %93 = vector.broadcast %72 : f32 to vector<1x8x128xf32>
      %94 = arith.select %92, %93, %87 : vector<1x8x128xi1>, vector<1x8x128xf32>
      %c0_i32_47 = arith.constant 0 : i32
      %95 = vector.broadcast %c0_i32_47 : i32 to vector<1x8x128xi32>
      %96 = arith.cmpi eq, %78, %95 : vector<1x8x128xi32>
      %c2_i32 = arith.constant 2 : i32
      %97 = vector.broadcast %c2_i32 : i32 to vector<1x8x128xi32>
      %98 = arith.cmpi eq, %79, %97 : vector<1x8x128xi32>
      %99 = arith.andi %96, %98 : vector<1x8x128xi1>
      %100 = vector.broadcast %77 : f32 to vector<1x8x128xf32>
      %101 = arith.select %99, %100, %94 : vector<1x8x128xi1>, vector<1x8x128xf32>
      %c0_48 = arith.constant 0 : index
      %c0_49 = arith.constant 0 : index
      %c0_50 = arith.constant 0 : index
      %102 = vector.load %arg6[%c0_48, %c0_49, %c0_50] : memref<1x8x128xf32, #tpu.memory_space<vmem>>, vector<1x8x128xf32>
      tpu.vector_store %arg6[%c0_48, %c0_49, %c0_50], %101 {strides = array<i32>} : memref<1x8x128xf32, #tpu.memory_space<vmem>>, vector<1x8x128xf32>,
    } else {
    }
    return
  }
  func.func @transform_0(%arg0: i32, %arg1: i32) -> (i32, i32) {
    %c1_i32 = arith.constant 1 : i32
    %0 = arith.muli %arg0, %c1_i32 : i32
    %1 = arith.addi %0, %arg1 : i32
    %c0_i32 = arith.constant 0 : i32
    %2 = arith.minsi %1, %c0_i32 : i32
    %c0_i32_0 = arith.constant 0 : i32
    %c0_i32_1 = arith.constant 0 : i32
    return %2, %c0_i32_0 : i32, i32
  }
  func.func @transform_1(%arg0: i32, %arg1: i32) -> (i32, i32) {
    %c1_i32 = arith.constant 1 : i32
    %0 = arith.muli %arg0, %c1_i32 : i32
    %1 = arith.addi %0, %arg1 : i32
    %c0_i32 = arith.constant 0 : i32
    %2 = arith.minsi %1, %c0_i32 : i32
    %c0_i32_0 = arith.constant 0 : i32
    %c0_i32_1 = arith.constant 0 : i32
    return %2, %c0_i32_0 : i32, i32
  }
  func.func @transform_2(%arg0: i32, %arg1: i32) -> (i32, i32) {
    %c1_i32 = arith.constant 1 : i32
    %0 = arith.muli %arg0, %c1_i32 : i32
    %1 = arith.addi %0, %arg1 : i32
    %c0_i32 = arith.constant 0 : i32
    %2 = arith.minsi %1, %c0_i32 : i32
    %c0_i32_0 = arith.constant 0 : i32
    %c0_i32_1 = arith.constant 0 : i32
    return %2, %c0_i32_0 : i32, i32
  }
  func.func @transform_3(%arg0: i32, %arg1: i32) -> (i32, i32) {
    %c1_i32 = arith.constant 1 : i32
    %0 = arith.muli %arg0, %c1_i32 : i32
    %1 = arith.addi %0, %arg1 : i32
    %c0_i32 = arith.constant 0 : i32
    %2 = arith.minsi %1, %c0_i32 : i32
    %c0_i32_0 = arith.constant 0 : i32
    %c0_i32_1 = arith.constant 0 : i32
    return %2, %c0_i32_0 : i32, i32
  }
  func.func @transform_4(%arg0: i32, %arg1: i32) -> (i32, i32, i32) {
    %c0_i32 = arith.constant 0 : i32
    %c0_i32_0 = arith.constant 0 : i32
    %c0_i32_1 = arith.constant 0 : i32
    return %arg0, %c0_i32, %c0_i32_0 : i32, i32, i32
  }
}

</mosaic_0001>

<bundles_post_ra>
// kernel: csd_loss.1
= control target key start
LH: loop header
LB: loop body
LE: loop exit
PB: predicated region body
PF: predicated region fallthrough
CT: control target
= control target key end

     0   :  { %v1720_v0 = vlaneseq  ;;  %v915_v5 = vmov 0   ;;  %vm238_vm0 = vcmask 171008   ;;  %vm284_vm2 = vcmask 164864   ;;  %s1715_s0 = inlined_call_operand.vmem [shape: f32[122,21], index: 0, kind: input, shape index: {}]   ;;  %s1716_s1 = inlined_call_operand.vmem [shape: f32[122,21], index: 1, kind: input, shape index: {}]   ;;  %s1717_s3 = inlined_call_operand.vmem [shape: f32[122,4], index: 3, kind: input, shape index: {}]   ;;  %s1718_s2 = inlined_call_operand.vmem [shape: f32[122,4], index: 2, kind: input, shape index: {}]   ;;  %s1719_s4 = inlined_call_operand.vmem [shape: f32[1,8,128], index: 4, kind: output, shape index: {}]  }
   0x1   :  { %v946_v1 = vld [vmem:[%s1715_s0 + $0x10] sm:$0xff]  ;;  %v954_v3 = vld [vmem:[%s1715_s0] sm:$0xff]  ;;  %v959_v4 = vld [vmem:[%s1715_s0 + $0x18] sm:$0xff]  ;;  %849 = vset.pattern.permute.xlu0 %v915_v5  ;;  %850 = vset.pattern.permute.xlu1 %v915_v5  ;;  %vm153_vm3 = vcmask 0   ;;  %v916_v51 = vmov 0.0   ;;  %vm711_vm6 = vcmask 7168  }
   0x2   :  { %v949_v2 = vand.u32 127, %v1720_v0  ;;  %v967_v6 = vld [vmem:[%s1715_s0 + $0x8] sm:$0xff]  ;;  %v988_v13 = vld [vmem:[%s1715_s0 + $0x20] sm:$0xff]  ;;  %v1004_v19 = vld [vmem:[%s1715_s0 + $0x38] sm:$0xff]  ;;  %154 = vst.msk [vmem:[#allocation4] sm:$0x1] %vm153_vm3, %v916_v51 }
   0x3   :  { %v983_v12 = vld [vmem:[%s1715_s0 + $0x28] sm:$0xff]  ;;  %v1009_v20 = vld [vmem:[%s1715_s0 + $0x30] sm:$0xff]  ;;  %v1027_v26 = vld [vmem:[%s1715_s0 + $0x40] sm:$0xff] }
   0x4   :  { %1723 = vst [vmem:[#allocation5_spill] sm:$0xff] %v949_v2  ;;  %vm221_vm1 = vcmp.ge.s32.totalorder %v949_v2, 1  ;;  %v1022_v25 = vld [vmem:[%s1715_s0 + $0x48] sm:$0xff]  ;;  %v1040_v31 = vld [vmem:[%s1715_s0 + $0x58] sm:$0xff]  ;;  %v1045_v32 = vld [vmem:[%s1715_s0 + $0x50] sm:$0xff] }
   0x5   :  { %v224_v7 = vsel %vm221_vm1, %v946_v1, -inf  ;;  %v222_v8 = vsel %vm221_vm1, %v954_v3, -inf  ;;  %v225_v9 = vsel %vm221_vm1, %v959_v4, -inf  ;;  %v223_v14 = vsel %vm221_vm1, %v967_v6, -inf  ;;  %v1058_v37 = vld [vmem:[%s1715_s0 + $0x68] sm:$0xff]  ;;  %v1063_v38 = vld [vmem:[%s1715_s0 + $0x60] sm:$0xff] }
   0x6   :  { %v245_v10 = vsel %vm238_vm0, %v224_v7, -inf  ;;  %v239_v11 = vsel %vm238_vm0, %v222_v8, -inf  ;;  %v248_v15 = vsel %vm238_vm0, %v225_v9, -inf  ;;  %v242_v16 = vsel %vm238_vm0, %v223_v14, -inf  ;;  %v1076_v43 = vld [vmem:[%s1715_s0 + $0x78] sm:$0x3] }
   0x7   :  { %246 = vmax.xlane.f32.xlu1 %v245_v10  ;;  %240 = vmax.xlane.f32.xlu0 %v239_v11  ;;  %v227_v17 = vsel %vm221_vm1, %v983_v12, -inf  ;;  %v226_v18 = vsel %vm221_vm1, %v988_v13, -inf  ;;  %v229_v23 = vsel %vm221_vm1, %v1004_v19, -inf  ;;  %v228_v24 = vsel %vm221_vm1, %v1009_v20, -inf  ;;  %v1081_v44 = vld [vmem:[%s1715_s0 + $0x70] sm:$0xff] }
   0x8   :  { %v254_v21 = vsel %vm238_vm0, %v227_v17, -inf  ;;  %v251_v22 = vsel %vm238_vm0, %v226_v18, -inf  ;;  %v260_v27 = vsel %vm238_vm0, %v229_v23, -inf  ;;  %v257_v28 = vsel %vm238_vm0, %v228_v24, -inf }
   0x9   :  { %v231_v29 = vsel %vm221_vm1, %v1022_v25, -inf  ;;  %v230_v30 = vsel %vm221_vm1, %v1027_v26, -inf  ;;  %v233_v35 = vsel %vm221_vm1, %v1040_v31, -inf  ;;  %v232_v36 = vsel %vm221_vm1, %v1045_v32, -inf }
   0xa   :  { %v266_v33 = vsel %vm238_vm0, %v231_v29, -inf  ;;  %v263_v34 = vsel %vm238_vm0, %v230_v30, -inf  ;;  %v272_v39 = vsel %vm238_vm0, %v233_v35, -inf  ;;  %v269_v40 = vsel %vm238_vm0, %v232_v36, -inf }
   0xb   :  { %249 = vmax.xlane.f32.xlu1 %v248_v15  ;;  %243 = vmax.xlane.f32.xlu0 %v242_v16  ;;  %v235_v41 = vsel %vm221_vm1, %v1058_v37, -inf  ;;  %v234_v42 = vsel %vm221_vm1, %v1063_v38, -inf  ;;  %v237_v47 = vsel %vm221_vm1, %v1076_v43, -inf  ;;  %v236_v48 = vsel %vm221_vm1, %v1081_v44, -inf }
   0xc   :  { %v278_v45 = vsel %vm238_vm0, %v235_v41, -inf  ;;  %v275_v46 = vsel %vm238_vm0, %v234_v42, -inf  ;;  %v285_v49 = vsel %vm284_vm2, %v237_v47, -inf  ;;  %v281_v50 = vsel %vm238_vm0, %v236_v48, -inf }
   0xf   :  { %255 = vmax.xlane.f32.xlu1 %v254_v21  ;;  %252 = vmax.xlane.f32.xlu0 %v251_v22 }
  0x13   :  { %261 = vmax.xlane.f32.xlu1 %v260_v27  ;;  %258 = vmax.xlane.f32.xlu0 %v257_v28 }
  0x17   :  { %267 = vmax.xlane.f32.xlu1 %v266_v33  ;;  %264 = vmax.xlane.f32.xlu0 %v263_v34 }
  0x1b   :  { %273 = vmax.xlane.f32.xlu1 %v272_v39  ;;  %270 = vmax.xlane.f32.xlu0 %v269_v40 }
  0x1f   :  { %279 = vmax.xlane.f32.xlu1 %v278_v45  ;;  %276 = vmax.xlane.f32.xlu0 %v275_v46 }
  0x23   :  { %286 = vmax.xlane.f32.xlu1 %v285_v49  ;;  %282 = vmax.xlane.f32.xlu0 %v281_v50 }
  0x90   :  { %v247_v52 = vpop.xlane.xlu1 %246  ;;  %v241_v53 = vpop.xlane.xlu0 %240 }
  0x91   :  { %vm290_vm4 = vcmp.gt.f32.partialorder %v247_v52, %v946_v1  ;;  %vm288_vm5 = vcmp.gt.f32.partialorder %v241_v53, %v954_v3 }
  0x92   :  { %v448_v54 = vsel %vm288_vm5, 1, %v915_v5  ;;  %v826_v55 = vsel %vm290_vm4, 1.0, %v916_v51  ;;  %v824_v56 = vsel %vm288_vm5, 1.0, %v916_v51  ;;  %v450_v8 = vsel %vm290_vm4, 1, %v915_v5 }
  0x93   :  { %465 = vperm.xlu0 %849, %v448_v54   ;;  %v715_v62 = vsel %vm711_vm6, %v826_v55, 0.0  ;;  %v712_v63 = vsel %vm711_vm6, %v824_v56, 0.0 }
  0x94   :  { %v250_v57 = vpop.xlane.xlu1 %249  ;;  %v244_v58 = vpop.xlane.xlu0 %243 }
  0x95   :  { %vm291_vm7 = vcmp.gt.f32.partialorder %v250_v57, %v959_v4  ;;  %vm289_vm8 = vcmp.gt.f32.partialorder %v244_v58, %v967_v6 }
  0x96   :  { %v827_v59 = vsel %vm291_vm7, 1.0, %v916_v51  ;;  %v449_v60 = vsel %vm289_vm8, 1, %v915_v5  ;;  %v825_v61 = vsel %vm289_vm8, 1.0, %v916_v51  ;;  %v451_v18 = vsel %vm291_vm7, 1, %v915_v5 }
  0x97   :  { %v713_v7 = vsel %vm711_vm6, %v825_v61, 0.0  ;;  %468 = vperm.xlu1 %850, %v449_v60   ;;  %v717_v14 = vsel %vm711_vm6, %v827_v59, 0.0 }
  0x98   :  { %v714_v9 = vadd.f32 %v713_v7, %v712_v63  ;;  %v256_v10 = vpop.xlane.xlu1 %255  ;;  %v253_v11 = vpop.xlane.xlu0 %252 }
  0x99   :  { %vm293_vm9 = vcmp.gt.f32.partialorder %v256_v10, %v983_v12  ;;  %vm292_vm10 = vcmp.gt.f32.partialorder %v253_v11, %v988_v13 }
  0x9a   :  { %v716_v15 = vadd.f32 %v715_v62, %v714_v9  ;;  %v829_v16 = vsel %vm293_vm9, 1.0, %v916_v51  ;;  %v828_v17 = vsel %vm292_vm10, 1.0, %v916_v51  ;;  %v452_v33 = vsel %vm292_vm10, 1, %v915_v5 }
  0x9b   :  { %471 = vperm.xlu1 %850, %v450_v8   ;;  %v719_v22 = vsel %vm711_vm6, %v828_v17, 0.0  ;;  %v721_v27 = vsel %vm711_vm6, %v829_v16, 0.0  ;;  %v453_v47 = vsel %vm293_vm9, 1, %v915_v5  ;;  %vm741_vm9 = vcmask 1024  }
  0x9c   :  { %v718_v21 = vadd.f32 %v717_v14, %v716_v15  ;;  %v262_v23 = vpop.xlane.xlu1 %261  ;;  %v259_v24 = vpop.xlane.xlu0 %258  ;;  %vm149_vm10 = vcmask 163840  }
  0x9d   :  { %vm295_vm11 = vcmp.gt.f32.partialorder %v262_v23, %v1004_v19  ;;  %vm294_vm12 = vcmp.gt.f32.partialorder %v259_v24, %v1009_v20  ;;  %150 = vst.msk [vmem:[#allocation2] sm:$0x1] %vm149_vm10, %v916_v51 }
  0x9e   :  { %v720_v28 = vadd.f32 %v719_v22, %v718_v21  ;;  %v831_v29 = vsel %vm295_vm11, 1.0, %v916_v51  ;;  %v830_v30 = vsel %vm294_vm12, 1.0, %v916_v51  ;;  %v454_v58 = vsel %vm294_vm12, 1, %v915_v5 }
  0x9f   :  { %474 = vperm.xlu1 %850, %v451_v18   ;;  %v723_v35 = vsel %vm711_vm6, %v830_v30, 0.0  ;;  %v725_v40 = vsel %vm711_vm6, %v831_v29, 0.0  ;;  %v455_v11 = vsel %vm295_vm11, 1, %v915_v5  ;;  %vm652_vm11 = vcmask 31744  }
  0xa0   :  { %v722_v34 = vadd.f32 %v721_v27, %v720_v28  ;;  %v268_v36 = vpop.xlane.xlu1 %267  ;;  %v265_v39 = vpop.xlane.xlu0 %264 }
  0xa1   :  { %vm297_vm13 = vcmp.gt.f32.partialorder %v268_v36, %v1022_v25  ;;  %vm296_vm14 = vcmp.gt.f32.partialorder %v265_v39, %v1027_v26 }
  0xa2   :  { %v724_v41 = vadd.f32 %v723_v35, %v722_v34  ;;  %v457_v42 = vsel %vm297_vm13, 1, %v915_v5  ;;  %v833_v45 = vsel %vm297_vm13, 1.0, %v916_v51  ;;  %v832_v46 = vsel %vm296_vm14, 1.0, %v916_v51 }
  0xa3   :  { %492 = vperm.xlu0 %849, %v457_v42   ;;  %477 = vperm.xlu1 %850, %v452_v33   ;;  %v727_v49 = vsel %vm711_vm6, %v832_v46, 0.0  ;;  %v729_v53 = vsel %vm711_vm6, %v833_v45, 0.0  ;;  %v456_v27 = vsel %vm296_vm14, 1, %v915_v5 }
  0xa4   :  { %v726_v48 = vadd.f32 %v725_v40, %v724_v41  ;;  %v274_v50 = vpop.xlane.xlu1 %273  ;;  %v271_v52 = vpop.xlane.xlu0 %270 }
  0xa5   :  { %vm299_vm15 = vcmp.gt.f32.partialorder %v274_v50, %v1040_v31  ;;  %vm298_vm1 = vcmp.gt.f32.partialorder %v271_v52, %v1045_v32  ;;  %v1207_v50 = vadd.f32 1e-07, %v954_v3  ;;  %v172_v52 = vld [vmem:[%s1716_s1 + $0x8] sm:$0xff]  ;;  %v1224_v3 = vadd.f32 1e-07, %v946_v1  ;;  %v174_v1 = vld [vmem:[%s1716_s1 + $0x18] sm:$0xff] }
  0xa6   :  { %v728_v54 = vadd.f32 %v727_v49, %v726_v48  ;;  %v459_v55 = vsel %vm299_vm15, 1, %v915_v5  ;;  %v835_v56 = vsel %vm299_vm15, 1.0, %v916_v51  ;;  %v834_v57 = vsel %vm298_vm1, 1.0, %v916_v51 }
  0xa7   :  { %498 = vperm.xlu0 %849, %v459_v55   ;;  %480 = vperm.xlu1 %850, %v453_v47   ;;  %v731_v60 = vsel %vm711_vm6, %v834_v57, 0.0  ;;  %v733_v63 = vsel %vm711_vm6, %v835_v56, 0.0  ;;  %v458_v34 = vsel %vm298_vm1, 1, %v915_v5  ;;  %v694_v47 = vld [vmem:[#allocation4] sm:$0x1]  ;;  %851 = vlog2.f32 %v1207_v50 }
  0xa8   :  { %v730_v59 = vadd.f32 %v729_v53, %v728_v54  ;;  %v280_v61 = vpop.xlane.xlu1 %279  ;;  %v277_v62 = vpop.xlane.xlu0 %276  ;;  %v1213_v53 = vadd.f32 1e-07, %v967_v6  ;;  %v1217_v55 = vadd.f32 1e-07, %v172_v52  ;;  %v1228_v56 = vadd.f32 1e-07, %v959_v4 }
  0xa9   :  { %vm301_vm4 = vcmp.gt.f32.partialorder %v280_v61, %v1058_v37  ;;  %vm300_vm5 = vcmp.gt.f32.partialorder %v277_v62, %v1063_v38  ;;  %v1235_v57 = vadd.f32 1e-07, %v983_v12  ;;  %v1246_v4 = vadd.f32 1e-07, %v1004_v19  ;;  %v176_v61 = vld [vmem:[%s1716_s1 + $0x28] sm:$0xff] }
  0xaa   :  { %v732_v7 = vadd.f32 %v731_v60, %v730_v59  ;;  %v461_v8 = vsel %vm301_vm4, 1, %v915_v5  ;;  %v837_v9 = vsel %vm301_vm4, 1.0, %v916_v51  ;;  %v836_v10 = vsel %vm300_vm5, 1.0, %v916_v51  ;;  %v175_v59 = vld [vmem:[%s1716_s1 + $0x20] sm:$0xff] }
  0xab   :  { %504 = vperm.xlu0 %849, %v461_v8   ;;  %483 = vperm.xlu1 %850, %v454_v58   ;;  %v735_v15 = vsel %vm711_vm6, %v836_v10, 0.0  ;;  %v737_v18 = vsel %vm711_vm6, %v837_v9, 0.0  ;;  %v460_v40 = vsel %vm300_vm5, 1, %v915_v5  ;;  %853 = vlog2.f32 %v1213_v53 }
  0xac   :  { %v734_v14 = vadd.f32 %v733_v63, %v732_v7  ;;  %v287_v16 = vpop.xlane.xlu1 %286  ;;  %v283_v17 = vpop.xlane.xlu0 %282  ;;  %v1239_v58 = vadd.f32 1e-07, %v988_v13  ;;  %v1252_v12 = vadd.f32 1e-07, %v1022_v25  ;;  %v180_v13 = vld [vmem:[%s1716_s1 + $0x48] sm:$0xff]  ;;  %v182_v7 = vld [vmem:[%s1716_s1 + $0x58] sm:$0xff] }
  0xad   :  { %vm303_vm7 = vcmp.gt.f32.partialorder %v287_v16, %v1076_v43  ;;  %vm302_vm8 = vcmp.gt.f32.partialorder %v283_v17, %v1081_v44  ;;  %v1259_v60 = vadd.f32 1e-07, %v174_v1  ;;  %v1262_v19 = vadd.f32 1e-07, %v175_v59 }
  0xae   :  { %v736_v21 = vadd.f32 %v735_v15, %v734_v14  ;;  %v463_v22 = vsel %vm303_vm7, 1, %v915_v5  ;;  %v839_v24 = vsel %vm303_vm7, 1.0, %v916_v51  ;;  %v838_v23 = vsel %vm302_vm8, 1.0, %v916_v51  ;;  %v203_v14 = vld [vmem:[%s1717_s3] sm:$0xff] }
  0xaf   :  { %510 = vperm.xlu0 %849, %v463_v22   ;;  %486 = vperm.xlu1 %850, %v455_v11   ;;  %v739_v29 = vsel %vm711_vm6, %v838_v23, 0.0  ;;  %v742_v30 = vsel %vm741_vm9, %v839_v24, 0.0  ;;  %v462_v42 = vsel %vm302_vm8, 1, %v915_v5  ;;  %vm151_vm6 = vcmask 24576   ;;  %v171_v5 = vld [vmem:[%s1716_s1] sm:$0xff] }
  0xb0   :  { %v738_v28 = vadd.f32 %v737_v18, %v736_v21  ;;  %152 = vst.msk [vmem:[#allocation3] sm:$0x1] %vm151_vm6, %v916_v51  ;;  %v1215_v54 = vadd.f32 1e-07, %v171_v5  ;;  %v173_v51 = vld [vmem:[%s1716_s1 + $0x10] sm:$0xff]  ;;  %v917_v15 = vmov -1.0  }
  0xb1   :  { %v1232_v6 = vadd.f32 1e-07, %v173_v51  ;;  %v1268_v25 = vadd.f32 1e-07, %v180_v13  ;;  %v1271_v62 = vadd.f32 1e-07, %v1009_v20 }
  0xb2   :  { %v740_v33 = vadd.f32 %v739_v29, %v738_v28  ;;  %855 = vlog2.f32 %v1215_v54  ;;  %v1276_v63 = vadd.f32 1e-07, %v176_v61  ;;  %v1282_v9 = vadd.f32 1e-07, %v1027_v26  ;;  %v204_v21 = vld [vmem:[%s1717_s3 + $0x8] sm:$0xff]  ;;  %v187_v28 = vld [vmem:[%s1718_s2] sm:$0xff] }
  0xb3   :  { %489 = vperm.xlu1 %850, %v456_v27   ;;  %857 = vlog2.f32 %v1217_v55  ;;  %v1286_v10 = vadd.f32 1e-07, %v1040_v31  ;;  %v1297_v16 = vadd.f32 1e-07, %v182_v7  ;;  %v1300_v31 = vadd.f32 1e-07, %v1045_v32 }
  0xb4   :  { %v743_v35 = vadd.f32 %v742_v30, %v740_v33  ;;  %859 = vlog2.f32 %v1224_v3  ;;  %v852_v8 = vpop.eup %851  ;;  %v1305_v18 = vadd.f32 1e-07, %v1058_v37  ;;  %v1318_v33 = vadd.f32 1e-07, %v1063_v38  ;;  %v206_v13 = vld [vmem:[%s1717_s3 + $0x18] sm:$0xff]  ;;  %v207_v61 = vld [vmem:[%s1717_s3 + $0x20] sm:$0xff] }
  0xb5   :  { %861 = vlog2.f32 %v1228_v56  ;;  %v385_v23 = vmul.f32 0.6931472, %v852_v8  ;;  %v1334_v38 = vadd.f32 1e-07, %v1081_v44 }
  0xb6   :  { %v744_v36 = vrot.slane %v743_v35, 4  ;;  %863 = vlog2.f32 %v1232_v6 }
  0xb7   :  { %495 = vperm.xlu1 %850, %v458_v34   ;;  %865 = vlog2.f32 %v1235_v57 }
  0xb8   :  { %v745_v41 = vadd.f32 %v744_v36, %v743_v35  ;;  %867 = vlog2.f32 %v1239_v58  ;;  %v854_v20 = vpop.eup %853  ;;  %v1325_v36 = vadd.f32 1e-07, %v1076_v43  ;;  %v337_v43 = vsub.f32 %v1217_v55, %v1213_v53  ;;  %v189_v53 = vld [vmem:[%s1718_s2 + $0x10] sm:$0xff] }
  0xb9   :  { %869 = vlog2.f32 %v1246_v4  ;;  %v387_v30 = vmul.f32 0.6931472, %v854_v20  ;;  %v338_v20 = vsub.f32 %v1232_v6, %v1224_v3  ;;  %v178_v3 = vld [vmem:[%s1716_s1 + $0x38] sm:$0xff] }
  0xba   :  { %v746_v39 = vrot.slane %v745_v41, 2  ;;  %871 = vlog2.f32 %v1252_v12 }
  0xbb   :  { %501 = vperm.xlu1 %850, %v460_v40   ;;  %873 = vlog2.f32 %v1259_v60  ;;  %v188_v40 = vld [vmem:[%s1718_s2 + $0x8] sm:$0xff] }
  0xbc   :  { %v747_v45 = vadd.f32 %v746_v39, %v745_v41  ;;  %875 = vlog2.f32 %v1262_v19  ;;  %v205_v41 = vld [vmem:[%s1717_s3 + $0x10] sm:$0xff] }
  0xbd   :  { %877 = vlog2.f32 %v1268_v25 }
  0xbe   :  { %v748_v46 = vrot.slane %v747_v45, 1  ;;  %879 = vlog2.f32 %v1271_v62 }
  0xbf   :  { %507 = vperm.xlu1 %850, %v462_v42   ;;  %v856_v11 = vpop.eup %855  ;;  %881 = vlog2.f32 %v1276_v63  ;;  %v336_v42 = vsub.f32 %v1215_v54, %v1207_v50  ;;  %v177_v50 = vld [vmem:[%s1716_s1 + $0x30] sm:$0xff] }
  0xc0   :  { %v749_v48 = vadd.f32 %v748_v46, %v747_v45  ;;  %v858_v17 = vpop.eup %857  ;;  %883 = vlog2.f32 %v1282_v9  ;;  %v353_v24 = vmul.f32 0.6931472, %v856_v11 }
  0xc1   :  { %v860_v22 = vpop.eup %859  ;;  %885 = vlog2.f32 %v1286_v10  ;;  %v355_v29 = vmul.f32 0.6931472, %v858_v17  ;;  %v184_v17 = vld [vmem:[%s1716_s1 + $0x68] sm:$0xff] }
  0xc2   :  { %v750_v49 = vadd.f32 %v749_v48, %v694_v47  ;;  %v862_v32 = vpop.eup %861  ;;  %887 = vlog2.f32 %v1297_v16  ;;  %v416_v45 = vsub.f32 %v353_v24, %v385_v23  ;;  %v389_v5 = vmul.f32 0.6931472, %v860_v22 }
  0xc3   :  { %v864_v37 = vpop.eup %863  ;;  %889 = vlog2.f32 %v1300_v31  ;;  %v417_v48 = vsub.f32 %v355_v29, %v387_v30 }
  0xc4   :  { %752 = vst.msk [vmem:[#allocation4] sm:$0x1] %vm153_vm3, %v750_v49  ;;  %vm544_vm3 = vcmp.eq.s32.totalorder %v949_v2, 0  ;;  %v1321_v35 = vpop.eup %865  ;;  %891 = vlog2.f32 %v1305_v18  ;;  %v357_v49 = vmul.f32 0.6931472, %v864_v37  ;;  %v1352_v1 = vmul.f32 %v416_v45, %v336_v42  ;;  %v201_v2 = vld [vmem:[%s1718_s2 + $0x70] sm:$0xff] }
  0xc5   :  { %v1295_v26 = vsel %vm544_vm3, 1.0, %v917_v15  ;;  %v868_v39 = vpop.eup %867  ;;  %893 = vlog2.f32 %v1318_v33  ;;  %v1362_v8 = vmul.f32 %v417_v48, %v337_v43  ;;  %v1369_v15 = vadd.f32 1e-07, %v177_v50 }
  0xc6   :  { %v546_v27 = vmul.f32 %v1295_v26, %v203_v14  ;;  %v547_v34 = vmul.f32 %v1295_v26, %v204_v21  ;;  %v1338_v47 = vpop.eup %869  ;;  %v548_v44 = vmul.f32 %v1295_v26, %v205_v41  ;;  %895 = vlog2.f32 %v1325_v36  ;;  %v212_v14 = vld [vmem:[%s1717_s3 + $0x48] sm:$0xff] }
  0xc7   :  { %v872_v52 = vpop.eup %871  ;;  %897 = vlog2.f32 %v1334_v38  ;;  %v418_v11 = vsub.f32 %v357_v49, %v389_v5  ;;  %v549_v29 = vmul.f32 %v1295_v26, %v206_v13  ;;  %v393_v37 = vmul.f32 0.6931472, %v868_v39  ;;  %v191_v49 = vld [vmem:[%s1718_s2 + $0x20] sm:$0xff]  ;;  %v196_v5 = vld [vmem:[%s1718_s2 + $0x48] sm:$0xff] }
  0xc8   :  { %v562_v46 = vadd.f32 %v546_v27, %v187_v28  ;;  %v563_v51 = vadd.f32 %v547_v34, %v188_v40  ;;  %v874_v54 = vpop.eup %873  ;;  %v564_v24 = vadd.f32 %v548_v44, %v189_v53  ;;  %v391_v27 = vmul.f32 0.6931472, %v862_v32  ;;  %v190_v28 = vld [vmem:[%s1718_s2 + $0x18] sm:$0xff]  ;;  %v208_v40 = vld [vmem:[%s1717_s3 + $0x28] sm:$0xff] }
  0xc9   :  { %v876_v55 = vpop.eup %875  ;;  %v359_v23 = vmul.f32 0.6931472, %v874_v54  ;;  %v550_v34 = vmul.f32 %v1295_v26, %v207_v61  ;;  %v403_v42 = vmul.f32 0.6931472, %v872_v52  ;;  %v555_v45 = vmul.f32 %v1295_v26, %v212_v14  ;;  %v192_v14 = vld [vmem:[%s1718_s2 + $0x28] sm:$0xff] }
  0xca   :  { %v1354_v59 = vmul.f32 %v562_v46, %v562_v46  ;;  %v878_v7 = vpop.eup %877  ;;  %v1376_v22 = vmul.f32 %v563_v51, %v563_v51  ;;  %v361_v30 = vmul.f32 0.6931472, %v876_v55  ;;  %v1392_v46 = vadd.f32 1e-07, %v184_v17 }
  0xcb   :  { %v1374_v21 = vpop.eup %879  ;;  %v371_v41 = vmul.f32 0.6931472, %v878_v7  ;;  %v1394_v48 = vmul.f32 %v418_v11, %v338_v20  ;;  %v339_v39 = vsub.f32 %v1259_v60, %v1228_v56  ;;  %899 = vlog2.f32 %v1369_v15  ;;  %v214_v60 = vld [vmem:[%s1717_s3 + $0x58] sm:$0xff] }
  0xcc   :  { %v882_v6 = vpop.eup %881  ;;  %v1405_v52 = vadd.f32 1e-07, %v178_v3  ;;  %v419_v44 = vsub.f32 %v359_v23, %v391_v27  ;;  %v340_v50 = vsub.f32 %v1262_v19, %v1239_v58  ;;  %v395_v56 = vmul.f32 0.6931472, %v1321_v35  ;;  %v209_v58 = vld [vmem:[%s1717_s3 + $0x30] sm:$0xff]  ;;  %v216_v27 = vld [vmem:[%s1717_s3 + $0x68] sm:$0xff] }
  0xcd   :  { %v1389_v32 = vpop.eup %883  ;;  %v363_v54 = vmul.f32 0.6931472, %v882_v6  ;;  %v565_v55 = vadd.f32 %v549_v29, %v190_v28  ;;  %v420_v13 = vsub.f32 %v361_v30, %v393_v37  ;;  %v345_v61 = vsub.f32 %v1268_v25, %v1252_v12  ;;  %v179_v12 = vld [vmem:[%s1716_s1 + $0x40] sm:$0xff]  ;;  %v198_v29 = vld [vmem:[%s1718_s2 + $0x58] sm:$0xff] }
  0xce   :  { %v886_v43 = vpop.eup %885  ;;  %v551_v7 = vmul.f32 %v1295_v26, %v208_v40  ;;  %v566_v20 = vadd.f32 %v550_v34, %v191_v49  ;;  %v425_v35 = vsub.f32 %v371_v41, %v403_v42  ;;  %v571_v11 = vadd.f32 %v555_v45, %v196_v5 }
  0xcf   :  { %v888_v51 = vpop.eup %887  ;;  %901 = vlog2.f32 %v1392_v46  ;;  %v407_v17 = vmul.f32 0.6931472, %v886_v43  ;;  %v557_v23 = vmul.f32 %v1295_v26, %v214_v60  ;;  %v1433_v3 = vmul.f32 %v564_v24, %v564_v24  ;;  %v193_v24 = vld [vmem:[%s1718_s2 + $0x30] sm:$0xff] }
  0xd0   :  { %v1413_v53 = vpop.eup %889  ;;  %v375_v25 = vmul.f32 0.6931472, %v888_v51  ;;  %903 = vlog2.f32 %v1405_v52  ;;  %v341_v6 = vsub.f32 %v1276_v63, %v1235_v57  ;;  %v421_v28 = vsub.f32 %v363_v54, %v395_v56  ;;  %v210_v57 = vld [vmem:[%s1717_s3 + $0x38] sm:$0xff]  ;;  %v181_v51 = vld [vmem:[%s1716_s1 + $0x50] sm:$0xff] }
  0xd1   :  { %v892_v19 = vpop.eup %891  ;;  %v552_v30 = vmul.f32 %v1295_v26, %v209_v58  ;;  %v1443_v34 = vmul.f32 %v419_v44, %v339_v39  ;;  %v1445_v40 = vmul.f32 %v565_v55, %v565_v55  ;;  %v567_v41 = vadd.f32 %v551_v7, %v192_v14  ;;  %v218_v63 = vld [vmem:[%s1717_s3 + $0x78] sm:$0x3]  ;;  %v200_v55 = vld [vmem:[%s1718_s2 + $0x68] sm:$0xff] }
  0xd2   :  { %v1441_v37 = vpop.eup %893  ;;  %v1456_v42 = vadd.f32 1e-07, %v179_v12  ;;  %v1458_v43 = vmul.f32 %v420_v13, %v340_v50  ;;  %v1460_v39 = vmul.f32 %v566_v20, %v566_v20  ;;  %v1462_v49 = vmul.f32 %v425_v35, %v345_v61  ;;  %v211_v13 = vld [vmem:[%s1717_s3 + $0x40] sm:$0xff]  ;;  %v186_v20 = vld [vmem:[%s1716_s1 + $0x78] sm:$0x3] }
  0xd3   :  { %v896_v45 = vpop.eup %895  ;;  %v559_v5 = vmul.f32 %v1295_v26, %v216_v27  ;;  %v1470_v54 = vmul.f32 %v571_v11, %v571_v11  ;;  %v347_v56 = vsub.f32 %v1297_v16, %v1286_v10  ;;  %v427_v60 = vsub.f32 %v375_v25, %v407_v17  ;;  %v194_v11 = vld [vmem:[%s1718_s2 + $0x38] sm:$0xff] }
  0xd4   :  { %v1468_v44 = vpop.eup %897  ;;  %v573_v50 = vadd.f32 %v557_v23, %v198_v29  ;;  %v1480_v61 = vmul.f32 %v421_v28, %v341_v6  ;;  %v568_v7 = vadd.f32 %v552_v30, %v193_v24  ;;  %v553_v58 = vmul.f32 %v1295_v26, %v210_v57  ;;  %v202_v14 = vld [vmem:[%s1718_s2 + $0x78] sm:$0x3]  ;;  %v213_v28 = vld [vmem:[%s1717_s3 + $0x50] sm:$0xff]  ;;  %v183_v29 = vld [vmem:[%s1716_s1 + $0x60] sm:$0xff] }
  0xd5   :  { %v561_v10 = vmul.f32 %v1295_v26, %v218_v63  ;;  %v1487_v16 = vmul.f32 %v567_v41, %v567_v41  ;;  %905 = vlog2.f32 %v1456_v42  ;;  %v1498_v12 = vadd.f32 1e-07, %v181_v51  ;;  %v195_v24 = vld [vmem:[%s1718_s2 + $0x40] sm:$0xff] }
  0xd6   :  { %v1503_v17 = vmul.f32 0.6931472, %v1374_v21  ;;  %v1505_v23 = vmul.f32 0.6931472, %v892_v19  ;;  %v575_v27 = vadd.f32 %v559_v5, %v200_v55  ;;  %v554_v6 = vmul.f32 %v1295_v26, %v211_v13  ;;  %v215_v57 = vld [vmem:[%s1717_s3 + $0x60] sm:$0xff] }
  0xd7   :  { %v1514_v30 = vmul.f32 %v427_v60, %v347_v56  ;;  %v1516_v41 = vmul.f32 %v573_v50, %v573_v50  ;;  %v1520_v19 = vadd.f32 1e-07, %v186_v20  ;;  %v1528_v5 = vmul.f32 %v568_v7, %v568_v7  ;;  %v217_v20 = vld [vmem:[%s1717_s3 + $0x70] sm:$0xff] }
  0xd8   :  { %v900_v63 = vpop.eup %899  ;;  %v569_v56 = vadd.f32 %v553_v58, %v194_v11  ;;  %v577_v60 = vadd.f32 %v561_v10, %v202_v14  ;;  %v1533_v50 = vmul.f32 0.6931472, %v1338_v47  ;;  %907 = vlog2.f32 %v1498_v12  ;;  %v197_v47 = vld [vmem:[%s1718_s2 + $0x50] sm:$0xff] }
  0xd9   :  { %v556_v55 = vmul.f32 %v1295_v26, %v213_v28  ;;  %v1537_v13 = vadd.f32 1e-07, %v183_v29  ;;  %v1542_v0 = vmul.f32 %v575_v27, %v575_v27  ;;  %v1544_v21 = vmul.f32 0.6931472, %v896_v45  ;;  %v185_v11 = vld [vmem:[%s1716_s1 + $0x70] sm:$0xff]  ;;  %v199_v27 = vld [vmem:[%s1718_s2 + $0x60] sm:$0xff] }
  0xda   :  { %v570_v58 = vadd.f32 %v554_v6, %v195_v24  ;;  %v558_v10 = vmul.f32 %v1295_v26, %v215_v57  ;;  %v365_v28 = vmul.f32 0.6931472, %v900_v63  ;;  %909 = vlog2.f32 %v1520_v19 }
  0xdb   :  { %1724 = vst [vmem:[#allocation6_spill] sm:$0xff] %v1542_v0  ;;  %v1557_v45 = vmul.f32 0.6931472, %v1389_v32  ;;  %v1562_v24 = vmul.f32 %v569_v56, %v569_v56  ;;  %v1564_v57 = vmul.f32 %v577_v60, %v577_v60  ;;  %v1567_v63 = vmul.f32 0.6931472, %v1413_v53 }
  0xdc   :  { %v902_v14 = vpop.eup %901  ;;  %v560_v29 = vmul.f32 %v1295_v26, %v217_v20  ;;  %v572_v35 = vadd.f32 %v556_v55, %v197_v47  ;;  %911 = vlog2.f32 %v1537_v13  ;;  %v1576_v56 = vadd.f32 1e-07, %v185_v11 }
  0xdd   :  { %v904_v6 = vpop.eup %903  ;;  %1725 = vst [vmem:[#allocation7_spill] sm:$0xff] %v1564_v57  ;;  %v379_v57 = vmul.f32 0.6931472, %v902_v14  ;;  %v1578_v0 = vmul.f32 %v570_v58, %v570_v58  ;;  %v346_v26 = vsub.f32 %v1498_v12, %v1300_v31  ;;  %v574_v53 = vadd.f32 %v558_v10, %v199_v27 }
  0xde   :  { %v422_v55 = vsub.f32 %v365_v28, %v1503_v17  ;;  %v367_v20 = vmul.f32 0.6931472, %v904_v6  ;;  %v1585_v47 = vmul.f32 0.6931472, %v1441_v37  ;;  %v348_v11 = vsub.f32 %v1537_v13, %v1318_v33 }
  0xdf   :  { %v1590_v14 = vmul.f32 0.6931472, %v1468_v44  ;;  %v576_v58 = vadd.f32 %v560_v29, %v201_v2  ;;  %v1592_v32 = vmul.f32 %v572_v35, %v572_v35  ;;  %913 = vlog2.f32 %v1576_v56 }
  0xe0   :  { %v429_v27 = vsub.f32 %v379_v57, %v1505_v23  ;;  %v1600_v6 = vmul.f32 %v574_v53, %v574_v53  ;;  %v1726_v44 = vsub.f32 %v1369_v15, %v1271_v62  ;;  %v423_v29 = vsub.f32 %v367_v20, %v1533_v50 }
  0xe1   :  { %v1614_v57 = vmul.f32 %v576_v58, %v576_v58 }
  0xe2   :  { %v906_v17 = vpop.eup %905  ;;  %v438_v35 = vmul.f32 %v422_v55, %v1726_v44 }
  0xe3   :  { %v369_v62 = vmul.f32 0.6931472, %v906_v17 }
  0xe5   :  { %v908_v15 = vpop.eup %907 }
  0xe7   :  { %v910_v17 = vpop.eup %909 }
  0xe9   :  { %v912_v44 = vpop.eup %911 }
 0x10e   :  { %v466_v51 = vpop.permute.xlu0 %465 }
 0x10f   :  { %vm512_vm13 = vcmp.eq.s32.totalorder %v466_v51, 1 }
 0x110   :  { %v528_v2 = vsel %vm512_vm13, %v1352_v1, 0.0 }
 0x111   :  { %v611_v50 = vsel %vm238_vm0, %v528_v2, 0.0  ;;  %v373_v2 = vmul.f32 0.6931472, %v908_v15 }
 0x112   :  { %v1500_v25 = vpop.permute.xlu1 %468 }
 0x113   :  { %vm513_vm12 = vcmp.eq.s32.totalorder %v1500_v25, 1  ;;  %v350_v25 = vsub.f32 %v1576_v56, %v1334_v38 }
 0x114   :  { %v529_v37 = vsel %vm513_vm12, %v1362_v8, 0.0  ;;  %v595_v10 = vsel %vm513_vm12, %v1376_v22, 0.0  ;;  %v594_v8 = vsel %vm512_vm13, %v1354_v59, 0.0 }
 0x115   :  { %v612_v1 = vsel %vm238_vm0, %v529_v37, 0.0  ;;  %v653_v55 = vsel %vm652_vm11, %v594_v8, 0.0 }
 0x116   :  { %v472_v7 = vpop.permute.xlu1 %471  ;;  %v613_v37 = vadd.f32 %v612_v1, %v611_v50 }
 0x117   :  { %vm514_vm14 = vcmp.eq.s32.totalorder %v472_v7, 1 }
 0x118   :  { %v530_v22 = vsel %vm514_vm14, %v1394_v48, 0.0  ;;  %v596_v23 = vsel %vm514_vm14, %v1433_v3, 0.0  ;;  %v1727_v3 = vsub.f32 %v1392_v46, %v1305_v18 }
 0x119   :  { %v614_v20 = vsel %vm238_vm0, %v530_v22, 0.0  ;;  %v656_v58 = vsel %vm652_vm11, %v596_v23, 0.0 }
 0x11a   :  { %v475_v60 = vpop.permute.xlu1 %474  ;;  %v1624_v7 = vmul.f32 %v429_v27, %v1727_v3  ;;  %v424_v27 = vsub.f32 %v369_v62, %v1557_v45  ;;  %v615_v8 = vadd.f32 %v614_v20, %v613_v37  ;;  %v377_v3 = vmul.f32 0.6931472, %v912_v44 }
 0x11b   :  { %vm515_vm15 = vcmp.eq.s32.totalorder %v475_v60, 1  ;;  %v654_v60 = vsel %vm652_vm11, %v595_v10, 0.0 }
 0x11c   :  { %v531_v51 = vsel %vm515_vm15, %v1443_v34, 0.0  ;;  %v597_v59 = vsel %vm515_vm15, %v1445_v40, 0.0  ;;  %v655_v10 = vadd.f32 %v654_v60, %v653_v55  ;;  %v914_v55 = vpop.eup %913 }
 0x11d   :  { %v616_v18 = vsel %vm238_vm0, %v531_v51, 0.0  ;;  %v658_v46 = vsel %vm652_vm11, %v597_v59, 0.0 }
 0x11e   :  { %v478_v28 = vpop.permute.xlu1 %477  ;;  %v493_v53 = vpop.permute.xlu0 %492  ;;  %v657_v22 = vadd.f32 %v656_v58, %v655_v10  ;;  %v617_v51 = vadd.f32 %v616_v18, %v615_v8 }
 0x11f   :  { %vm516_vm1 = vcmp.eq.s32.totalorder %v478_v28, 1  ;;  %vm521_vm7 = vcmp.eq.s32.totalorder %v493_v53, 1 }
 0x120   :  { %v532_v34 = vsel %vm516_vm1, %v1458_v43, 0.0  ;;  %v598_v40 = vsel %vm516_vm1, %v1460_v39, 0.0  ;;  %v1728_v39 = vsub.f32 %v1405_v52, %v1246_v4  ;;  %v659_v45 = vadd.f32 %v658_v46, %v657_v22 }
 0x121   :  { %v618_v43 = vsel %vm238_vm0, %v532_v34, 0.0  ;;  %v660_v28 = vsel %vm652_vm11, %v598_v40, 0.0  ;;  %v1729_v4 = vsub.f32 %v1456_v42, %v1282_v9  ;;  %v428_v9 = vsub.f32 %v377_v3, %v1585_v47 }
 0x122   :  { %v481_v48 = vpop.permute.xlu1 %480  ;;  %v439_v50 = vmul.f32 %v423_v29, %v1728_v39  ;;  %v499_v62 = vpop.permute.xlu0 %498  ;;  %v619_v20 = vadd.f32 %v618_v43, %v617_v51  ;;  %v661_v58 = vadd.f32 %v660_v28, %v659_v45  ;;  %v426_v29 = vsub.f32 %v373_v2, %v1567_v63 }
 0x123   :  { %vm517_vm4 = vcmp.eq.s32.totalorder %v481_v48, 1  ;;  %v383_v48 = vmul.f32 0.6931472, %v910_v17  ;;  %v440_v52 = vmul.f32 %v424_v27, %v1729_v4  ;;  %v381_v42 = vmul.f32 0.6931472, %v914_v55 }
 0x124   :  { %v533_v23 = vsel %vm517_vm4, %v1480_v61, 0.0  ;;  %v599_v1 = vsel %vm517_vm4, %v1487_v16, 0.0  ;;  %v442_v22 = vmul.f32 %v426_v29, %v346_v26  ;;  %vm523_vm9 = vcmp.eq.s32.totalorder %v499_v62, 1 }
 0x125   :  { %v620_v61 = vsel %vm238_vm0, %v533_v23, 0.0  ;;  %v662_v16 = vsel %vm652_vm11, %v599_v1, 0.0  ;;  %v431_v44 = vsub.f32 %v383_v48, %v1544_v21  ;;  %v603_v23 = vsel %vm521_vm7, %v1470_v54, 0.0 }
 0x126   :  { %v484_v60 = vpop.permute.xlu1 %483  ;;  %v621_v10 = vadd.f32 %v620_v61, %v619_v20  ;;  %v663_v34 = vadd.f32 %v662_v16, %v661_v58  ;;  %v505_v2 = vpop.permute.xlu0 %504  ;;  %v444_v31 = vmul.f32 %v428_v9, %v348_v11  ;;  %v670_v54 = vsel %vm652_vm11, %v603_v23, 0.0 }
 0x127   :  { %vm518_vm5 = vcmp.eq.s32.totalorder %v484_v60, 1  ;;  %vm525_vm13 = vcmp.eq.s32.totalorder %v505_v2, 1  ;;  %v1730_v45 = vsub.f32 %v1520_v19, %v1325_v36  ;;  %v1731_v36 = vld [vmem:[#allocation6_spill] sm:$0xff]  ;;  %vm682_vm4 = vcmask 25600  }
 0x128   :  { %v534_v15 = vsel %vm518_vm5, %v438_v35, 0.0  ;;  %v600_v59 = vsel %vm518_vm5, %v1528_v5, 0.0  ;;  %v541_v3 = vsel %vm525_vm13, %v1624_v7, 0.0  ;;  %v607_v19 = vsel %vm525_vm13, %v1731_v36, 0.0 }
 0x129   :  { %v622_v35 = vsel %vm238_vm0, %v534_v15, 0.0  ;;  %v664_v5 = vsel %vm652_vm11, %v600_v59, 0.0  ;;  %v447_v15 = vmul.f32 %v431_v44, %v1730_v45  ;;  %v678_v29 = vsel %vm652_vm11, %v607_v19, 0.0  ;;  %v1734_v19 = vld [vmem:[#allocation5_spill] sm:$0xff] }
 0x12a   :  { %v487_v37 = vpop.permute.xlu1 %486  ;;  %v623_v27 = vadd.f32 %v622_v35, %v621_v10  ;;  %v665_v63 = vadd.f32 %v664_v5, %v663_v34  ;;  %v511_v51 = vpop.permute.xlu0 %510  ;;  %v1732_v5 = vld [vmem:[#allocation7_spill] sm:$0xff] }
 0x12b   :  { %vm519_vm8 = vcmp.eq.s32.totalorder %v487_v37, 1  ;;  %vm527_vm15 = vcmp.eq.s32.totalorder %v511_v51, 1  ;;  %v636_v37 = vsel %vm238_vm0, %v541_v3, 0.0  ;;  %v1733_v3 = vlaneseq }
 0x12c   :  { %v535_v17 = vsel %vm519_vm8, %v439_v50, 0.0  ;;  %v601_v40 = vsel %vm519_vm8, %v1562_v24, 0.0  ;;  %v537_v24 = vsel %vm521_vm7, %v1462_v49, 0.0  ;;  %v430_v49 = vsub.f32 %v381_v42, %v1590_v14 }
 0x12d   :  { %v624_v18 = vsel %vm238_vm0, %v535_v17, 0.0  ;;  %v666_v46 = vsel %vm652_vm11, %v601_v40, 0.0  ;;  %v628_v12 = vsel %vm238_vm0, %v537_v24, 0.0  ;;  %v605_v50 = vsel %vm523_vm9, %v1516_v41, 0.0 }
 0x12e   :  { %v490_v8 = vpop.permute.xlu1 %489  ;;  %v625_v47 = vadd.f32 %v624_v18, %v623_v27  ;;  %v667_v1 = vadd.f32 %v666_v46, %v665_v63  ;;  %v674_v62 = vsel %vm652_vm11, %v605_v50, 0.0  ;;  %v543_v35 = vsel %vm527_vm15, %v447_v15, 0.0 }
 0x12f   :  { %vm520_vm12 = vcmp.eq.s32.totalorder %v490_v8, 1  ;;  %v609_v10 = vsel %vm527_vm15, %v1732_v5, 0.0  ;;  %v640_v27 = vsel %vm284_vm2, %v543_v35, 0.0  ;;  %v782_v36 = vshrl.u32 %v1733_v3, 7 }
 0x130   :  { %v536_v60 = vsel %vm520_vm12, %v440_v52, 0.0  ;;  %v602_v43 = vsel %vm520_vm12, %v1578_v0, 0.0  ;;  %v539_v0 = vsel %vm523_vm9, %v1514_v30, 0.0  ;;  %v446_v30 = vmul.f32 %v430_v49, %v350_v25 }
 0x131   :  { %v626_v21 = vsel %vm238_vm0, %v536_v60, 0.0  ;;  %v668_v28 = vsel %vm652_vm11, %v602_v43, 0.0  ;;  %v632_v41 = vsel %vm238_vm0, %v539_v0, 0.0  ;;  %v683_v63 = vsel %vm682_vm4, %v609_v10, 0.0 }
 0x132   :  { %v627_v26 = vadd.f32 %v626_v21, %v625_v47  ;;  %v669_v53 = vadd.f32 %v668_v28, %v667_v1  ;;  %v496_v39 = vpop.permute.xlu1 %495  ;;  %v651_v28 = vld [vmem:[#allocation3] sm:$0x1]  ;;  %vm787_vm2 = vcmp.eq.s32.totalorder %v1734_v19, 1 }
 0x133   :  { %vm522_vm14 = vcmp.eq.s32.totalorder %v496_v39, 1 }
 0x134   :  { %v538_v33 = vsel %vm522_vm14, %v442_v22, 0.0  ;;  %v604_v13 = vsel %vm522_vm14, %v1592_v32, 0.0  ;;  %v629_v11 = vadd.f32 %v628_v12, %v627_v26  ;;  %v671_v14 = vadd.f32 %v670_v54, %v669_v53 }
 0x135   :  { %v630_v59 = vsel %vm238_vm0, %v538_v33, 0.0  ;;  %v672_v61 = vsel %vm652_vm11, %v604_v13, 0.0 }
 0x136   :  { %v631_v16 = vadd.f32 %v630_v59, %v629_v11  ;;  %v673_v32 = vadd.f32 %v672_v61, %v671_v14  ;;  %v502_v48 = vpop.permute.xlu1 %501 }
 0x137   :  { %vm524_vm1 = vcmp.eq.s32.totalorder %v502_v48, 1  ;;  %v778_v48 = vld [vmem:[#allocation4] sm:$0x1] }
 0x138   :  { %v540_v55 = vsel %vm524_vm1, %v444_v31, 0.0  ;;  %v606_v20 = vsel %vm524_vm1, %v1600_v6, 0.0  ;;  %v633_v38 = vadd.f32 %v632_v41, %v631_v16  ;;  %v675_v56 = vadd.f32 %v674_v62, %v673_v32  ;;  %v610_v31 = vld [vmem:[#allocation2] sm:$0x1] }
 0x139   :  { %v634_v25 = vsel %vm238_vm0, %v540_v55, 0.0  ;;  %v676_v58 = vsel %vm652_vm11, %v606_v20, 0.0 }
 0x13a   :  { %v635_v4 = vadd.f32 %v634_v25, %v633_v38  ;;  %v677_v52 = vadd.f32 %v676_v58, %v675_v56  ;;  %v508_v7 = vpop.permute.xlu1 %507 }
 0x13b   :  { %vm526_vm5 = vcmp.eq.s32.totalorder %v508_v7, 1 }
 0x13c   :  { %v542_v34 = vsel %vm526_vm5, %v446_v30, 0.0  ;;  %v608_v6 = vsel %vm526_vm5, %v1614_v57, 0.0  ;;  %v637_v17 = vadd.f32 %v636_v37, %v635_v4  ;;  %v679_v40 = vadd.f32 %v678_v29, %v677_v52 }
 0x13d   :  { %v638_v18 = vsel %vm238_vm0, %v542_v34, 0.0  ;;  %v680_v46 = vsel %vm652_vm11, %v608_v6, 0.0  ;;  %vm783_vm0 = vcmp.eq.s32.totalorder %v782_v36, 0 }
 0x13e   :  { %v639_v9 = vadd.f32 %v638_v18, %v637_v17  ;;  %v681_v42 = vadd.f32 %v680_v46, %v679_v40  ;;  %vm788_vm11 = vmand %vm783_vm0, %vm787_vm2 }
 0x140   :  { %v641_v2 = vadd.f32 %v640_v27, %v639_v9  ;;  %v684_v44 = vadd.f32 %v683_v63, %v681_v42 }
 0x142   :  { %v642_v8 = vrot.slane %v641_v2, 4  ;;  %v685_v22 = vrot.slane %v684_v44, 4 }
 0x144   :  { %v643_v24 = vadd.f32 %v642_v8, %v641_v2  ;;  %v686_v23 = vadd.f32 %v685_v22, %v684_v44 }
 0x146   :  { %v644_v47 = vrot.slane %v643_v24, 2  ;;  %v687_v57 = vrot.slane %v686_v23, 2 }
 0x148   :  { %v645_v1 = vadd.f32 %v644_v47, %v643_v24  ;;  %v688_v60 = vadd.f32 %v687_v57, %v686_v23 }
 0x14a   :  { %v646_v43 = vrot.slane %v645_v1, 1  ;;  %v689_v21 = vrot.slane %v688_v60, 1 }
 0x14c   :  { %v647_v49 = vadd.f32 %v646_v43, %v645_v1  ;;  %v690_v12 = vadd.f32 %v689_v21, %v688_v60 }
 0x14e   :  { %v691_v54 = vadd.f32 %v690_v12, %v651_v28  ;;  %v648_v26 = vadd.f32 %v647_v49, %v610_v31 }
 0x150   :  { %693 = vst.msk [vmem:[#allocation3] sm:$0x1] %vm151_vm6, %v691_v54 }
 0x151   :  { %650 = vst.msk [vmem:[#allocation2] sm:$0x1] %vm149_vm10, %v648_v26 }
 0x157   :  { %v767_v53 = vld [vmem:[#allocation3] sm:$0x1] }
 0x158   :  { %v756_v39 = vld [vmem:[#allocation2] sm:$0x1]  ;;  %v768_v0 = vsel %vm151_vm6, %v767_v53, 0.0  ;;  %vm791_vm6 = vcmp.eq.s32.totalorder %v1734_v19, 2 }
 0x159   :  { %v757_v50 = vsel %vm149_vm10, %v756_v39, 0.0  ;;  %769 = vadd.xlane.f32.xlu0 %v768_v0  ;;  %vm784_vm10 = vmand %vm783_vm0, %vm544_vm3 }
 0x15a   :  { %758 = vadd.xlane.f32.xlu1 %v757_v50  ;;  %vm792_vm7 = vmand %vm783_vm0, %vm791_vm6 }
 0x1e2   :  { %v770_v51 = vpop.xlane.xlu0 %769 }
 0x1e3   :  { %v759_v33 = vpop.xlane.xlu1 %758  ;;  %v771_v13 = vrot.slane %v770_v51, 4 }
 0x1e4   :  { %v760_v11 = vrot.slane %v759_v33, 4 }
 0x1e5   :  { %v772_v14 = vadd.f32 %v771_v13, %v770_v51 }
 0x1e6   :  { %v761_v45 = vadd.f32 %v760_v11, %v759_v33 }
 0x1e7   :  { %v773_v15 = vrot.slane %v772_v14, 2 }
 0x1e8   :  { %v762_v59 = vrot.slane %v761_v45, 2 }
 0x1e9   :  { %v774_v61 = vadd.f32 %v773_v15, %v772_v14 }
 0x1ea   :  { %v763_v30 = vadd.f32 %v762_v59, %v761_v45 }
 0x1eb   :  { %v775_v62 = vrot.slane %v774_v61, 1 }
 0x1ec   :  { %v764_v41 = vrot.slane %v763_v30, 1 }
 0x1ed   :  { %v776_v32 = vadd.f32 %v775_v62, %v774_v61 }
 0x1ee   :  { %v765_v16 = vadd.f32 %v764_v41, %v763_v30 }
 0x1f0   :  { %840 = vpush %v765_v16 }
 0x1f1   :  { %842 = vpush %v776_v32 }
 0x1f2   :  { %844 = vpush %v778_v48 }
 0x221   :  { %s841_s2 = spop %840 }
 0x222   :  { %v785_v55 = vstv %s841_s2  ;;  %s843_s7 = spop %842 }
 0x223   :  { %v786_v20 = vsel %vm784_vm10, %v785_v55, 0.0  ;;  %v789_v38 = vstv %s843_s7  ;;  %s845_s8 = spop %844 }
 0x224   :  { %v790_v56 = vsel %vm788_vm11, %v789_v38, %v786_v20  ;;  %v793_v25 = vstv %s845_s8 }
 0x225   :  { %v794_v58 = vsel %vm792_vm7, %v793_v25, %v790_v56 }
 0x226   :  { %795 = vst [vmem:[%s1719_s4] sm:$0xff] %v794_v58 }

</bundles_post_ra>
